<compile_context>
chip_gen: v6e
topology: v6e:2x2x1
jax: 0.10.0
libtpu: 0.0.40
codegen_flags: <defaults>
</compile_context>

<pallas_src>
import math

import jax
import jax.numpy as jnp
from jax.experimental import pallas as pl
from jax.experimental.pallas import tpu as pltpu


# --------------------------------------------------------------------------- #
# Fused Pallas kernel
# --------------------------------------------------------------------------- #
def fused_gcn_kernel(x_ref, w_ref, a_ref, b_ref, o_ref):
    """One grid step = (batch n, l-tile lt).

    x_ref: (1, TL*V, C_in)     bf16 input rows for this tile (row = l*V + v)
    w_ref: (S+1, C_in, C_out)  resident channel matrices (thetas + Align)
    a_ref: (S, V, V)           resident normalized supports
    b_ref: (1, C_out)          resident combined bias (f32)
    o_ref: (1, V, TL*C_out)    lane-dense output block
    """
    S, V, _ = a_ref.shape
    S1, _, C_out = w_ref.shape
    TL = o_ref.shape[2] // C_out

    x_tile = x_ref[0]                                          # (TL*V, C_in) bf16

    # Channel mix: one small-K matmul per channel matrix, f32 accumulation.
    # y[s][l*V + v, c] = sum_i x[n, i, v, l] * W_s[i, c]
    y = [jnp.dot(x_tile, w_ref[s], preferred_element_type=jnp.float32)
         for s in range(S1)]                                   # each (TL*V, C_out) f32
    # bf16 operands for the node-mix MXU matmuls (accumulation stays f32).
    y_bf = [y[s].astype(jnp.bfloat16) for s in range(S)]

    bias = b_ref[...]                                          # (1, C_out) f32

    chunks = []
    for l in range(TL):                                        # static unroll, TL small
        r0 = l * V
        # Align contribution (last channel matrix, no adjacency) + combined bias.
        acc = y[S1 - 1][r0:r0 + V, :] + bias                   # (V, C_out) f32
        for s in range(S):                                     # static, S <= 2
            acc = acc + jnp.dot(a_ref[s], y_bf[s][r0:r0 + V, :],
                                preferred_element_type=jnp.float32)
        chunks.append(jnp.maximum(acc, 0.0).astype(o_ref.dtype))

    # Single full-width (lane-dense) store of the whole (V, TL*C_out) tile.
    o_ref[0] = jnp.concatenate(chunks, axis=-1)


# --------------------------------------------------------------------------- #
# Tile picker: largest l-tile dividing L with legal layout + bounded VMEM
# --------------------------------------------------------------------------- #
def _pick_l_tile(L, V, c_in, c_out, budget_bytes=2 << 20):
    best = L
    for tl in range(L, 0, -1):
        if L % tl:
            continue
        lane_ok = (tl == L) or ((tl * c_out) % 128 == 0)   # lane-dense out block
        sub_ok = (tl == L) or ((tl * V) % 8 == 0)          # sublane-aligned x block
        if not (lane_ok and sub_ok):
            continue
        # double-buffered bf16 x-block + out-block
        blk = 2 * (tl * V * c_in * 2 + V * tl * c_out * 2)
        if blk <= budget_bytes:
            return tl
        best = tl
    return best


# --------------------------------------------------------------------------- #
# Wrapper (layout glue + pallas_call)
# --------------------------------------------------------------------------- #
def spatio_conv_layer_gcn_forward(x_nchw, adj, params, *,
                                  compute_dtype=jnp.bfloat16, out_dtype=None):
    N, C_in, V, L = x_nchw.shape
    C_out = params["thetas"][0].shape[1]
    S = len(params["thetas"])
    out_dtype = compute_dtype if out_dtype is None else out_dtype

    # ---- supports: adaptive softmax + symmetric normalization (once, plain JAX) ----
    supports = [adj.astype(jnp.float32)]
    if "E1" in params:
        logits = jax.nn.relu(
            params["E1"].astype(jnp.float32) @ params["E2"].astype(jnp.float32)
        )
        supports.append(jax.nn.softmax(logits, axis=1))
    assert len(supports) == S

    eye = jnp.eye(V, dtype=jnp.float32)

    def _norm(a):
        a = a + eye
        dinv = jax.lax.rsqrt(jnp.sum(a, axis=1))
        return (dinv[:, None] * a) * dinv[None, :]

    a_norm = jnp.stack([_norm(a) for a in supports]).astype(compute_dtype)   # (S, V, V)

    # ---- input layout: NCHW -> (N, L, V, C_in) -> (N, L*V, C_in), bf16 ----
    x_rows = (
        jnp.transpose(x_nchw, (0, 3, 2, 1)).reshape(N, L * V, C_in).astype(compute_dtype)
    )

    # ---- channel matrices: thetas + Align as a channel map (always folded) ----
    w_all = jnp.stack(list(params["thetas"]) + [params["align_w"]]).astype(compute_dtype)
    S1 = S + 1                                                               # (S1, C_in, C_out)

    # All biases (per-support + align) are plain adds to the final result: combine once.
    b_comb = (sum(params["bs"]) + params["align_b"]).astype(jnp.float32).reshape(1, C_out)

    TL = _pick_l_tile(L, V, C_in, C_out)
    n_lt = L // TL
    LC = L * C_out

    out = pl.pallas_call(
        fused_gcn_kernel,
        out_shape=jax.ShapeDtypeStruct((N, V, LC), out_dtype),
        grid=(N, n_lt),
        in_specs=[
            pl.BlockSpec((1, TL * V, C_in), lambda n, lt: (n, lt, 0)),
            pl.BlockSpec((S1, C_in, C_out), lambda n, lt: (0, 0, 0)),   # resident weights
            pl.BlockSpec((S, V, V), lambda n, lt: (0, 0, 0)),           # resident supports
            pl.BlockSpec((1, C_out), lambda n, lt: (0, 0)),             # resident bias
        ],
        out_specs=pl.BlockSpec((1, V, TL * C_out), lambda n, lt: (n, 0, lt)),
        compiler_params=pltpu.CompilerParams(
            dimension_semantics=("parallel", "parallel"),
            vmem_limit_bytes=32 * 1024 * 1024,
        ),
    )(x_rows, w_all, a_norm, b_comb)

    # TODO(synk): a downstream STGCN temporal layer could consume (N, V, L*C_out)
    # directly; the reshape+transpose back to NCHW is kept only to match the module API.
    return jnp.transpose(out.reshape(N, V, L, C_out), (0, 3, 1, 2))


# --------------------------------------------------------------------------- #
# Parameter init (deterministic, mirrors module __init__ shapes)
# --------------------------------------------------------------------------- #
def init_params(key, c_in, c_out, num_nodes, node_emb_len):
    keys = jax.random.split(key, 8)
    supports_len = 1 + (1 if node_emb_len > 0 else 0)

    # theta: (c_in, c_out), kaiming_uniform(a=sqrt(5)); torch fan_in = dim 1 = c_out
    fan_in = c_out
    gain = math.sqrt(2.0 / (1.0 + 5.0))
    t_bound = gain * math.sqrt(3.0 / fan_in)
    b_bound = 1.0 / math.sqrt(fan_in)

    thetas, bs = [], []
    for i in range(supports_len):
        thetas.append(
            jax.random.uniform(keys[i], (c_in, c_out), jnp.float32, -t_bound, t_bound)
        )
        bs.append(
            jax.random.uniform(keys[2 + i], (c_out,), jnp.float32, -b_bound, b_bound)
        )
    params = {"thetas": thetas, "bs": bs}

    if node_emb_len > 0:
        params["E1"] = jax.random.normal(keys[4], (num_nodes, node_emb_len), jnp.float32)
        params["E2"] = jax.random.normal(keys[5], (node_emb_len, num_nodes), jnp.float32)

    # Standard STGCN Align expressed as channel map W (c_in, c_out) + bias.
    if c_in > c_out:
        w_bound = 1.0 / math.sqrt(c_in)
        params["align_w"] = jax.random.uniform(
            keys[6], (c_in, c_out), jnp.float32, -w_bound, w_bound
        )
        params["align_b"] = jax.random.uniform(
            keys[7], (c_out,), jnp.float32, -w_bound, w_bound
        )
    elif c_in < c_out:
        params["align_w"] = jnp.eye(c_in, c_out, dtype=jnp.float32)  # zero-pad channels
        params["align_b"] = jnp.zeros((c_out,), jnp.float32)
    else:
        params["align_w"] = jnp.eye(c_in, dtype=jnp.float32)         # identity
        params["align_b"] = jnp.zeros((c_out,), jnp.float32)
    return params


# --------------------------------------------------------------------------- #
# Pure-JAX reference (mirrors the PyTorch forward exactly, in f32)
# --------------------------------------------------------------------------- #
def reference_forward(x, adj, params, c_out, num_nodes):
    supports = [adj]
    if "E1" in params:
        logits = jax.nn.relu(params["E1"] @ params["E2"])
        supports.append(jax.nn.softmax(logits, axis=1))

    result = (
        jnp.einsum("io,nivl->novl", params["align_w"], x)
        + params["align_b"].reshape(1, c_out, 1, 1)
    )
    for i, A in enumerate(supports):
        a = A + jnp.eye(num_nodes, dtype=jnp.float32)
        deg = jnp.sum(a, axis=1)
        dinv = 1.0 / jnp.sqrt(deg)
        norm_adj = jnp.diag(dinv) @ a @ jnp.diag(dinv)
        x_c = jnp.einsum("uv,ncvl->ncul", norm_adj, x)
        result = (
            result
            + jnp.einsum("io,nivl->novl", params["thetas"][i], x_c)
            + params["bs"][i].reshape(1, c_out, 1, 1)
        )
    return jax.nn.relu(result)


# --------------------------------------------------------------------------- #
if __name__ == "__main__":
    N, C_in, C_out, V, L, EMB = 2, 4, 16, 16, 8, 10   # L*C_out = 128 (lane-dense)

    key = jax.random.PRNGKey(0)
    kx, ka, kp = jax.random.split(key, 3)

    x = jax.random.normal(kx, (N, C_in, V, L), jnp.float32)          # NCHW
    adj_raw = jax.random.uniform(ka, (V, V), jnp.float32)
    adj = 0.5 * (adj_raw + adj_raw.T)                                # symmetric, >= 0
    params = init_params(kp, C_in, C_out, V, EMB)

    out = jax.block_until_ready(spatio_conv_layer_gcn_forward(x, adj, params))
    ref = jax.block_until_ready(reference_forward(x, adj, params, C_out, V))

    assert out.shape == (N, C_out, V, L), out.shape
    # bf16 matmul operands / bf16 output with f32 accumulation: loosened tolerance.
    assert jnp.allclose(out.astype(jnp.float32), ref, atol=3e-2, rtol=3e-2), float(
        jnp.max(jnp.abs(out.astype(jnp.float32) - ref))
    )
    print("KERNEL_OK")
</pallas_src>

<mosaic_0001>
module attributes {stable_mosaic.version = 11 : i64} {
  func.func @fused_gcn_kernel(%arg0: i32, %arg1: i32, %arg2: memref<1x128x4xbf16, #tpu.memory_space<vmem>>, %arg3: memref<3x4x16xbf16, #tpu.memory_space<vmem>>, %arg4: memref<2x16x16xbf16, #tpu.memory_space<vmem>>, %arg5: memref<1x16xf32, #tpu.memory_space<vmem>>, %arg6: memref<1x16x128xbf16, #tpu.memory_space<vmem>>) attributes {dimension_semantics = [#tpu.dimension_semantics<parallel>, #tpu.dimension_semantics<parallel>], iteration_bounds = array<i64: 2, 1>, scalar_prefetch = 0 : i64, scratch_operands = 0 : i64, tpu.core_type = #tpu.core_type<tc>, window_params = [{transform_indices = @transform_0, window_bounds = array<i64: 1, 128, 4>}, {pipeline_mode = #tpu.pipeline_mode<synchronous>, transform_indices = @transform_1, window_bounds = array<i64: 3, 4, 16>}, {pipeline_mode = #tpu.pipeline_mode<synchronous>, transform_indices = @transform_2, window_bounds = array<i64: 2, 16, 16>}, {pipeline_mode = #tpu.pipeline_mode<synchronous>, transform_indices = @transform_3, window_bounds = array<i64: 1, 16>}, {transform_indices = @transform_4, window_bounds = array<i64: 1, 16, 128>}]} {
    %c0 = arith.constant 0 : index
    %c0_0 = arith.constant 0 : index
    %c0_1 = arith.constant 0 : index
    %0 = vector.load %arg2[%c0, %c0_0, %c0_1] : memref<1x128x4xbf16, #tpu.memory_space<vmem>>, vector<1x128x4xbf16>
    %1 = vector.shape_cast %0 : vector<1x128x4xbf16> to vector<128x4xbf16>
    %c0_2 = arith.constant 0 : index
    %c0_3 = arith.constant 0 : index
    %c0_4 = arith.constant 0 : index
    %2 = vector.load %arg3[%c0_2, %c0_3, %c0_4] : memref<3x4x16xbf16, #tpu.memory_space<vmem>>, vector<1x4x16xbf16>
    %3 = vector.shape_cast %2 : vector<1x4x16xbf16> to vector<4x16xbf16>
    %cst = arith.constant dense<0.000000e+00> : vector<128x16xf32>
    %4 = tpu.matmul %1, %3, %cst {dimension_numbers = #tpu.dot_dimension_numbers<[1], [0], [0], [1], [0, 0, 1, 1], [], []>} : vector<128x4xbf16>, vector<4x16xbf16>, vector<128x16xf32> -> vector<128x16xf32>
    %c1 = arith.constant 1 : index
    %c0_5 = arith.constant 0 : index
    %c0_6 = arith.constant 0 : index
    %5 = vector.load %arg3[%c1, %c0_5, %c0_6] : memref<3x4x16xbf16, #tpu.memory_space<vmem>>, vector<1x4x16xbf16>
    %6 = vector.shape_cast %5 : vector<1x4x16xbf16> to vector<4x16xbf16>
    %cst_7 = arith.constant dense<0.000000e+00> : vector<128x16xf32>
    %7 = tpu.matmul %1, %6, %cst_7 {dimension_numbers = #tpu.dot_dimension_numbers<[1], [0], [0], [1], [0, 0, 1, 1], [], []>} : vector<128x4xbf16>, vector<4x16xbf16>, vector<128x16xf32> -> vector<128x16xf32>
    %c2 = arith.constant 2 : index
    %c0_8 = arith.constant 0 : index
    %c0_9 = arith.constant 0 : index
    %8 = vector.load %arg3[%c2, %c0_8, %c0_9] : memref<3x4x16xbf16, #tpu.memory_space<vmem>>, vector<1x4x16xbf16>
    %9 = vector.shape_cast %8 : vector<1x4x16xbf16> to vector<4x16xbf16>
    %cst_10 = arith.constant dense<0.000000e+00> : vector<128x16xf32>
    %10 = tpu.matmul %1, %9, %cst_10 {dimension_numbers = #tpu.dot_dimension_numbers<[1], [0], [0], [1], [0, 0, 1, 1], [], []>} : vector<128x4xbf16>, vector<4x16xbf16>, vector<128x16xf32> -> vector<128x16xf32>
    %11 = arith.truncf %4 : vector<128x16xf32> to vector<128x16xbf16>
    %12 = arith.truncf %7 : vector<128x16xf32> to vector<128x16xbf16>
    %c0_11 = arith.constant 0 : index
    %c0_12 = arith.constant 0 : index
    %13 = vector.load %arg5[%c0_11, %c0_12] : memref<1x16xf32, #tpu.memory_space<vmem>>, vector<1x16xf32>
    %14 = vector.extract_strided_slice %10 {offsets = [0, 0], sizes = [16, 16], strides = [1, 1]} : vector<128x16xf32> to vector<16x16xf32>
    %15 = vector.broadcast %13 : vector<1x16xf32> to vector<16x16xf32>
    %16 = arith.addf %14, %15 : vector<16x16xf32>
    %c0_13 = arith.constant 0 : index
    %c0_14 = arith.constant 0 : index
    %c0_15 = arith.constant 0 : index
    %17 = vector.load %arg4[%c0_13, %c0_14, %c0_15] : memref<2x16x16xbf16, #tpu.memory_space<vmem>>, vector<1x16x16xbf16>
    %18 = vector.shape_cast %17 : vector<1x16x16xbf16> to vector<16x16xbf16>
    %19 = vector.extract_strided_slice %11 {offsets = [0, 0], sizes = [16, 16], strides = [1, 1]} : vector<128x16xbf16> to vector<16x16xbf16>
    %cst_16 = arith.constant dense<0.000000e+00> : vector<16x16xf32>
    %20 = tpu.matmul %18, %19, %cst_16 {dimension_numbers = #tpu.dot_dimension_numbers<[1], [0], [0], [1], [0, 0, 1, 1], [], []>} : vector<16x16xbf16>, vector<16x16xbf16>, vector<16x16xf32> -> vector<16x16xf32>
    %21 = arith.addf %16, %20 : vector<16x16xf32>
    %c1_17 = arith.constant 1 : index
    %c0_18 = arith.constant 0 : index
    %c0_19 = arith.constant 0 : index
    %22 = vector.load %arg4[%c1_17, %c0_18, %c0_19] : memref<2x16x16xbf16, #tpu.memory_space<vmem>>, vector<1x16x16xbf16>
    %23 = vector.shape_cast %22 : vector<1x16x16xbf16> to vector<16x16xbf16>
    %24 = vector.extract_strided_slice %12 {offsets = [0, 0], sizes = [16, 16], strides = [1, 1]} : vector<128x16xbf16> to vector<16x16xbf16>
    %cst_20 = arith.constant dense<0.000000e+00> : vector<16x16xf32>
    %25 = tpu.matmul %23, %24, %cst_20 {dimension_numbers = #tpu.dot_dimension_numbers<[1], [0], [0], [1], [0, 0, 1, 1], [], []>} : vector<16x16xbf16>, vector<16x16xbf16>, vector<16x16xf32> -> vector<16x16xf32>
    %26 = arith.addf %21, %25 : vector<16x16xf32>
    %cst_21 = arith.constant 0.000000e+00 : f32
    %27 = vector.broadcast %cst_21 : f32 to vector<16x16xf32>
    %28 = arith.maximumf %26, %27 : vector<16x16xf32>
    %29 = arith.truncf %28 : vector<16x16xf32> to vector<16x16xbf16>
    %30 = vector.extract_strided_slice %10 {offsets = [16, 0], sizes = [16, 16], strides = [1, 1]} : vector<128x16xf32> to vector<16x16xf32>
    %31 = vector.broadcast %13 : vector<1x16xf32> to vector<16x16xf32>
    %32 = arith.addf %30, %31 : vector<16x16xf32>
    %c0_22 = arith.constant 0 : index
    %c0_23 = arith.constant 0 : index
    %c0_24 = arith.constant 0 : index
    %33 = vector.load %arg4[%c0_22, %c0_23, %c0_24] : memref<2x16x16xbf16, #tpu.memory_space<vmem>>, vector<1x16x16xbf16>
    %34 = vector.shape_cast %33 : vector<1x16x16xbf16> to vector<16x16xbf16>
    %35 = vector.extract_strided_slice %11 {offsets = [16, 0], sizes = [16, 16], strides = [1, 1]} : vector<128x16xbf16> to vector<16x16xbf16>
    %cst_25 = arith.constant dense<0.000000e+00> : vector<16x16xf32>
    %36 = tpu.matmul %34, %35, %cst_25 {dimension_numbers = #tpu.dot_dimension_numbers<[1], [0], [0], [1], [0, 0, 1, 1], [], []>} : vector<16x16xbf16>, vector<16x16xbf16>, vector<16x16xf32> -> vector<16x16xf32>
    %37 = arith.addf %32, %36 : vector<16x16xf32>
    %c1_26 = arith.constant 1 : index
    %c0_27 = arith.constant 0 : index
    %c0_28 = arith.constant 0 : index
    %38 = vector.load %arg4[%c1_26, %c0_27, %c0_28] : memref<2x16x16xbf16, #tpu.memory_space<vmem>>, vector<1x16x16xbf16>
    %39 = vector.shape_cast %38 : vector<1x16x16xbf16> to vector<16x16xbf16>
    %40 = vector.extract_strided_slice %12 {offsets = [16, 0], sizes = [16, 16], strides = [1, 1]} : vector<128x16xbf16> to vector<16x16xbf16>
    %cst_29 = arith.constant dense<0.000000e+00> : vector<16x16xf32>
    %41 = tpu.matmul %39, %40, %cst_29 {dimension_numbers = #tpu.dot_dimension_numbers<[1], [0], [0], [1], [0, 0, 1, 1], [], []>} : vector<16x16xbf16>, vector<16x16xbf16>, vector<16x16xf32> -> vector<16x16xf32>
    %42 = arith.addf %37, %41 : vector<16x16xf32>
    %cst_30 = arith.constant 0.000000e+00 : f32
    %43 = vector.broadcast %cst_30 : f32 to vector<16x16xf32>
    %44 = arith.maximumf %42, %43 : vector<16x16xf32>
    %45 = arith.truncf %44 : vector<16x16xf32> to vector<16x16xbf16>
    %46 = vector.extract_strided_slice %10 {offsets = [32, 0], sizes = [16, 16], strides = [1, 1]} : vector<128x16xf32> to vector<16x16xf32>
    %47 = vector.broadcast %13 : vector<1x16xf32> to vector<16x16xf32>
    %48 = arith.addf %46, %47 : vector<16x16xf32>
    %c0_31 = arith.constant 0 : index
    %c0_32 = arith.constant 0 : index
    %c0_33 = arith.constant 0 : index
    %49 = vector.load %arg4[%c0_31, %c0_32, %c0_33] : memref<2x16x16xbf16, #tpu.memory_space<vmem>>, vector<1x16x16xbf16>
    %50 = vector.shape_cast %49 : vector<1x16x16xbf16> to vector<16x16xbf16>
    %51 = vector.extract_strided_slice %11 {offsets = [32, 0], sizes = [16, 16], strides = [1, 1]} : vector<128x16xbf16> to vector<16x16xbf16>
    %cst_34 = arith.constant dense<0.000000e+00> : vector<16x16xf32>
    %52 = tpu.matmul %50, %51, %cst_34 {dimension_numbers = #tpu.dot_dimension_numbers<[1], [0], [0], [1], [0, 0, 1, 1], [], []>} : vector<16x16xbf16>, vector<16x16xbf16>, vector<16x16xf32> -> vector<16x16xf32>
    %53 = arith.addf %48, %52 : vector<16x16xf32>
    %c1_35 = arith.constant 1 : index
    %c0_36 = arith.constant 0 : index
    %c0_37 = arith.constant 0 : index
    %54 = vector.load %arg4[%c1_35, %c0_36, %c0_37] : memref<2x16x16xbf16, #tpu.memory_space<vmem>>, vector<1x16x16xbf16>
    %55 = vector.shape_cast %54 : vector<1x16x16xbf16> to vector<16x16xbf16>
    %56 = vector.extract_strided_slice %12 {offsets = [32, 0], sizes = [16, 16], strides = [1, 1]} : vector<128x16xbf16> to vector<16x16xbf16>
    %cst_38 = arith.constant dense<0.000000e+00> : vector<16x16xf32>
    %57 = tpu.matmul %55, %56, %cst_38 {dimension_numbers = #tpu.dot_dimension_numbers<[1], [0], [0], [1], [0, 0, 1, 1], [], []>} : vector<16x16xbf16>, vector<16x16xbf16>, vector<16x16xf32> -> vector<16x16xf32>
    %58 = arith.addf %53, %57 : vector<16x16xf32>
    %cst_39 = arith.constant 0.000000e+00 : f32
    %59 = vector.broadcast %cst_39 : f32 to vector<16x16xf32>
    %60 = arith.maximumf %58, %59 : vector<16x16xf32>
    %61 = arith.truncf %60 : vector<16x16xf32> to vector<16x16xbf16>
    %62 = vector.extract_strided_slice %10 {offsets = [48, 0], sizes = [16, 16], strides = [1, 1]} : vector<128x16xf32> to vector<16x16xf32>
    %63 = vector.broadcast %13 : vector<1x16xf32> to vector<16x16xf32>
    %64 = arith.addf %62, %63 : vector<16x16xf32>
    %c0_40 = arith.constant 0 : index
    %c0_41 = arith.constant 0 : index
    %c0_42 = arith.constant 0 : index
    %65 = vector.load %arg4[%c0_40, %c0_41, %c0_42] : memref<2x16x16xbf16, #tpu.memory_space<vmem>>, vector<1x16x16xbf16>
    %66 = vector.shape_cast %65 : vector<1x16x16xbf16> to vector<16x16xbf16>
    %67 = vector.extract_strided_slice %11 {offsets = [48, 0], sizes = [16, 16], strides = [1, 1]} : vector<128x16xbf16> to vector<16x16xbf16>
    %cst_43 = arith.constant dense<0.000000e+00> : vector<16x16xf32>
    %68 = tpu.matmul %66, %67, %cst_43 {dimension_numbers = #tpu.dot_dimension_numbers<[1], [0], [0], [1], [0, 0, 1, 1], [], []>} : vector<16x16xbf16>, vector<16x16xbf16>, vector<16x16xf32> -> vector<16x16xf32>
    %69 = arith.addf %64, %68 : vector<16x16xf32>
    %c1_44 = arith.constant 1 : index
    %c0_45 = arith.constant 0 : index
    %c0_46 = arith.constant 0 : index
    %70 = vector.load %arg4[%c1_44, %c0_45, %c0_46] : memref<2x16x16xbf16, #tpu.memory_space<vmem>>, vector<1x16x16xbf16>
    %71 = vector.shape_cast %70 : vector<1x16x16xbf16> to vector<16x16xbf16>
    %72 = vector.extract_strided_slice %12 {offsets = [48, 0], sizes = [16, 16], strides = [1, 1]} : vector<128x16xbf16> to vector<16x16xbf16>
    %cst_47 = arith.constant dense<0.000000e+00> : vector<16x16xf32>
    %73 = tpu.matmul %71, %72, %cst_47 {dimension_numbers = #tpu.dot_dimension_numbers<[1], [0], [0], [1], [0, 0, 1, 1], [], []>} : vector<16x16xbf16>, vector<16x16xbf16>, vector<16x16xf32> -> vector<16x16xf32>
    %74 = arith.addf %69, %73 : vector<16x16xf32>
    %cst_48 = arith.constant 0.000000e+00 : f32
    %75 = vector.broadcast %cst_48 : f32 to vector<16x16xf32>
    %76 = arith.maximumf %74, %75 : vector<16x16xf32>
    %77 = arith.truncf %76 : vector<16x16xf32> to vector<16x16xbf16>
    %78 = vector.extract_strided_slice %10 {offsets = [64, 0], sizes = [16, 16], strides = [1, 1]} : vector<128x16xf32> to vector<16x16xf32>
    %79 = vector.broadcast %13 : vector<1x16xf32> to vector<16x16xf32>
    %80 = arith.addf %78, %79 : vector<16x16xf32>
    %c0_49 = arith.constant 0 : index
    %c0_50 = arith.constant 0 : index
    %c0_51 = arith.constant 0 : index
    %81 = vector.load %arg4[%c0_49, %c0_50, %c0_51] : memref<2x16x16xbf16, #tpu.memory_space<vmem>>, vector<1x16x16xbf16>
    %82 = vector.shape_cast %81 : vector<1x16x16xbf16> to vector<16x16xbf16>
    %83 = vector.extract_strided_slice %11 {offsets = [64, 0], sizes = [16, 16], strides = [1, 1]} : vector<128x16xbf16> to vector<16x16xbf16>
    %cst_52 = arith.constant dense<0.000000e+00> : vector<16x16xf32>
    %84 = tpu.matmul %82, %83, %cst_52 {dimension_numbers = #tpu.dot_dimension_numbers<[1], [0], [0], [1], [0, 0, 1, 1], [], []>} : vector<16x16xbf16>, vector<16x16xbf16>, vector<16x16xf32> -> vector<16x16xf32>
    %85 = arith.addf %80, %84 : vector<16x16xf32>
    %c1_53 = arith.constant 1 : index
    %c0_54 = arith.constant 0 : index
    %c0_55 = arith.constant 0 : index
    %86 = vector.load %arg4[%c1_53, %c0_54, %c0_55] : memref<2x16x16xbf16, #tpu.memory_space<vmem>>, vector<1x16x16xbf16>
    %87 = vector.shape_cast %86 : vector<1x16x16xbf16> to vector<16x16xbf16>
    %88 = vector.extract_strided_slice %12 {offsets = [64, 0], sizes = [16, 16], strides = [1, 1]} : vector<128x16xbf16> to vector<16x16xbf16>
    %cst_56 = arith.constant dense<0.000000e+00> : vector<16x16xf32>
    %89 = tpu.matmul %87, %88, %cst_56 {dimension_numbers = #tpu.dot_dimension_numbers<[1], [0], [0], [1], [0, 0, 1, 1], [], []>} : vector<16x16xbf16>, vector<16x16xbf16>, vector<16x16xf32> -> vector<16x16xf32>
    %90 = arith.addf %85, %89 : vector<16x16xf32>
    %cst_57 = arith.constant 0.000000e+00 : f32
    %91 = vector.broadcast %cst_57 : f32 to vector<16x16xf32>
    %92 = arith.maximumf %90, %91 : vector<16x16xf32>
    %93 = arith.truncf %92 : vector<16x16xf32> to vector<16x16xbf16>
    %94 = vector.extract_strided_slice %10 {offsets = [80, 0], sizes = [16, 16], strides = [1, 1]} : vector<128x16xf32> to vector<16x16xf32>
    %95 = vector.broadcast %13 : vector<1x16xf32> to vector<16x16xf32>
    %96 = arith.addf %94, %95 : vector<16x16xf32>
    %c0_58 = arith.constant 0 : index
    %c0_59 = arith.constant 0 : index
    %c0_60 = arith.constant 0 : index
    %97 = vector.load %arg4[%c0_58, %c0_59, %c0_60] : memref<2x16x16xbf16, #tpu.memory_space<vmem>>, vector<1x16x16xbf16>
    %98 = vector.shape_cast %97 : vector<1x16x16xbf16> to vector<16x16xbf16>
    %99 = vector.extract_strided_slice %11 {offsets = [80, 0], sizes = [16, 16], strides = [1, 1]} : vector<128x16xbf16> to vector<16x16xbf16>
    %cst_61 = arith.constant dense<0.000000e+00> : vector<16x16xf32>
    %100 = tpu.matmul %98, %99, %cst_61 {dimension_numbers = #tpu.dot_dimension_numbers<[1], [0], [0], [1], [0, 0, 1, 1], [], []>} : vector<16x16xbf16>, vector<16x16xbf16>, vector<16x16xf32> -> vector<16x16xf32>
    %101 = arith.addf %96, %100 : vector<16x16xf32>
    %c1_62 = arith.constant 1 : index
    %c0_63 = arith.constant 0 : index
    %c0_64 = arith.constant 0 : index
    %102 = vector.load %arg4[%c1_62, %c0_63, %c0_64] : memref<2x16x16xbf16, #tpu.memory_space<vmem>>, vector<1x16x16xbf16>
    %103 = vector.shape_cast %102 : vector<1x16x16xbf16> to vector<16x16xbf16>
    %104 = vector.extract_strided_slice %12 {offsets = [80, 0], sizes = [16, 16], strides = [1, 1]} : vector<128x16xbf16> to vector<16x16xbf16>
    %cst_65 = arith.constant dense<0.000000e+00> : vector<16x16xf32>
    %105 = tpu.matmul %103, %104, %cst_65 {dimension_numbers = #tpu.dot_dimension_numbers<[1], [0], [0], [1], [0, 0, 1, 1], [], []>} : vector<16x16xbf16>, vector<16x16xbf16>, vector<16x16xf32> -> vector<16x16xf32>
    %106 = arith.addf %101, %105 : vector<16x16xf32>
    %cst_66 = arith.constant 0.000000e+00 : f32
    %107 = vector.broadcast %cst_66 : f32 to vector<16x16xf32>
    %108 = arith.maximumf %106, %107 : vector<16x16xf32>
    %109 = arith.truncf %108 : vector<16x16xf32> to vector<16x16xbf16>
    %110 = vector.extract_strided_slice %10 {offsets = [96, 0], sizes = [16, 16], strides = [1, 1]} : vector<128x16xf32> to vector<16x16xf32>
    %111 = vector.broadcast %13 : vector<1x16xf32> to vector<16x16xf32>
    %112 = arith.addf %110, %111 : vector<16x16xf32>
    %c0_67 = arith.constant 0 : index
    %c0_68 = arith.constant 0 : index
    %c0_69 = arith.constant 0 : index
    %113 = vector.load %arg4[%c0_67, %c0_68, %c0_69] : memref<2x16x16xbf16, #tpu.memory_space<vmem>>, vector<1x16x16xbf16>
    %114 = vector.shape_cast %113 : vector<1x16x16xbf16> to vector<16x16xbf16>
    %115 = vector.extract_strided_slice %11 {offsets = [96, 0], sizes = [16, 16], strides = [1, 1]} : vector<128x16xbf16> to vector<16x16xbf16>
    %cst_70 = arith.constant dense<0.000000e+00> : vector<16x16xf32>
    %116 = tpu.matmul %114, %115, %cst_70 {dimension_numbers = #tpu.dot_dimension_numbers<[1], [0], [0], [1], [0, 0, 1, 1], [], []>} : vector<16x16xbf16>, vector<16x16xbf16>, vector<16x16xf32> -> vector<16x16xf32>
    %117 = arith.addf %112, %116 : vector<16x16xf32>
    %c1_71 = arith.constant 1 : index
    %c0_72 = arith.constant 0 : index
    %c0_73 = arith.constant 0 : index
    %118 = vector.load %arg4[%c1_71, %c0_72, %c0_73] : memref<2x16x16xbf16, #tpu.memory_space<vmem>>, vector<1x16x16xbf16>
    %119 = vector.shape_cast %118 : vector<1x16x16xbf16> to vector<16x16xbf16>
    %120 = vector.extract_strided_slice %12 {offsets = [96, 0], sizes = [16, 16], strides = [1, 1]} : vector<128x16xbf16> to vector<16x16xbf16>
    %cst_74 = arith.constant dense<0.000000e+00> : vector<16x16xf32>
    %121 = tpu.matmul %119, %120, %cst_74 {dimension_numbers = #tpu.dot_dimension_numbers<[1], [0], [0], [1], [0, 0, 1, 1], [], []>} : vector<16x16xbf16>, vector<16x16xbf16>, vector<16x16xf32> -> vector<16x16xf32>
    %122 = arith.addf %117, %121 : vector<16x16xf32>
    %cst_75 = arith.constant 0.000000e+00 : f32
    %123 = vector.broadcast %cst_75 : f32 to vector<16x16xf32>
    %124 = arith.maximumf %122, %123 : vector<16x16xf32>
    %125 = arith.truncf %124 : vector<16x16xf32> to vector<16x16xbf16>
    %126 = vector.extract_strided_slice %10 {offsets = [112, 0], sizes = [16, 16], strides = [1, 1]} : vector<128x16xf32> to vector<16x16xf32>
    %127 = vector.broadcast %13 : vector<1x16xf32> to vector<16x16xf32>
    %128 = arith.addf %126, %127 : vector<16x16xf32>
    %c0_76 = arith.constant 0 : index
    %c0_77 = arith.constant 0 : index
    %c0_78 = arith.constant 0 : index
    %129 = vector.load %arg4[%c0_76, %c0_77, %c0_78] : memref<2x16x16xbf16, #tpu.memory_space<vmem>>, vector<1x16x16xbf16>
    %130 = vector.shape_cast %129 : vector<1x16x16xbf16> to vector<16x16xbf16>
    %131 = vector.extract_strided_slice %11 {offsets = [112, 0], sizes = [16, 16], strides = [1, 1]} : vector<128x16xbf16> to vector<16x16xbf16>
    %cst_79 = arith.constant dense<0.000000e+00> : vector<16x16xf32>
    %132 = tpu.matmul %130, %131, %cst_79 {dimension_numbers = #tpu.dot_dimension_numbers<[1], [0], [0], [1], [0, 0, 1, 1], [], []>} : vector<16x16xbf16>, vector<16x16xbf16>, vector<16x16xf32> -> vector<16x16xf32>
    %133 = arith.addf %128, %132 : vector<16x16xf32>
    %c1_80 = arith.constant 1 : index
    %c0_81 = arith.constant 0 : index
    %c0_82 = arith.constant 0 : index
    %134 = vector.load %arg4[%c1_80, %c0_81, %c0_82] : memref<2x16x16xbf16, #tpu.memory_space<vmem>>, vector<1x16x16xbf16>
    %135 = vector.shape_cast %134 : vector<1x16x16xbf16> to vector<16x16xbf16>
    %136 = vector.extract_strided_slice %12 {offsets = [112, 0], sizes = [16, 16], strides = [1, 1]} : vector<128x16xbf16> to vector<16x16xbf16>
    %cst_83 = arith.constant dense<0.000000e+00> : vector<16x16xf32>
    %137 = tpu.matmul %135, %136, %cst_83 {dimension_numbers = #tpu.dot_dimension_numbers<[1], [0], [0], [1], [0, 0, 1, 1], [], []>} : vector<16x16xbf16>, vector<16x16xbf16>, vector<16x16xf32> -> vector<16x16xf32>
    %138 = arith.addf %133, %137 : vector<16x16xf32>
    %cst_84 = arith.constant 0.000000e+00 : f32
    %139 = vector.broadcast %cst_84 : f32 to vector<16x16xf32>
    %140 = arith.maximumf %138, %139 : vector<16x16xf32>
    %141 = arith.truncf %140 : vector<16x16xf32> to vector<16x16xbf16>
    %142 = tpu.concatenate %29, %45, %61, %77, %93, %109, %125, %141 in 1 : vector<16x16xbf16>, vector<16x16xbf16>, vector<16x16xbf16>, vector<16x16xbf16>, vector<16x16xbf16>, vector<16x16xbf16>, vector<16x16xbf16>, vector<16x16xbf16> -> vector<16x128xbf16>
    %c0_85 = arith.constant 0 : index
    %c0_86 = arith.constant 0 : index
    %c0_87 = arith.constant 0 : index
    %143 = vector.load %arg6[%c0_85, %c0_86, %c0_87] : memref<1x16x128xbf16, #tpu.memory_space<vmem>>, vector<1x16x128xbf16>
    %144 = vector.shape_cast %143 : vector<1x16x128xbf16> to vector<16x128xbf16>
    %145 = vector.shape_cast %142 : vector<16x128xbf16> to vector<1x16x128xbf16>
    tpu.vector_store %arg6[%c0_85, %c0_86, %c0_87], %145 {strides = array<i32>} : memref<1x16x128xbf16, #tpu.memory_space<vmem>>, vector<1x16x128xbf16>,
    return
  }
  func.func @transform_0(%arg0: i32, %arg1: i32) -> (i32, i32, i32) {
    %c0_i32 = arith.constant 0 : i32
    %c0_i32_0 = arith.constant 0 : i32
    return %arg0, %arg1, %c0_i32 : i32, i32, i32
  }
  func.func @transform_1(%arg0: i32, %arg1: i32) -> (i32, i32, i32) {
    %c0_i32 = arith.constant 0 : i32
    %c0_i32_0 = arith.constant 0 : i32
    %c0_i32_1 = arith.constant 0 : i32
    %c0_i32_2 = arith.constant 0 : i32
    return %c0_i32, %c0_i32_0, %c0_i32_1 : i32, i32, i32
  }
  func.func @transform_2(%arg0: i32, %arg1: i32) -> (i32, i32, i32) {
    %c0_i32 = arith.constant 0 : i32
    %c0_i32_0 = arith.constant 0 : i32
    %c0_i32_1 = arith.constant 0 : i32
    %c0_i32_2 = arith.constant 0 : i32
    return %c0_i32, %c0_i32_0, %c0_i32_1 : i32, i32, i32
  }
  func.func @transform_3(%arg0: i32, %arg1: i32) -> (i32, i32) {
    %c0_i32 = arith.constant 0 : i32
    %c0_i32_0 = arith.constant 0 : i32
    %c0_i32_1 = arith.constant 0 : i32
    return %c0_i32, %c0_i32_0 : i32, i32
  }
  func.func @transform_4(%arg0: i32, %arg1: i32) -> (i32, i32, i32) {
    %c0_i32 = arith.constant 0 : i32
    %c0_i32_0 = arith.constant 0 : i32
    return %arg0, %c0_i32, %arg1 : i32, i32, i32
  }
}

</mosaic_0001>

<bundles_post_ra>
// kernel: tpu_custom_call.1
= control target key start
LH: loop header
LB: loop body
LE: loop exit
PB: predicated region body
PF: predicated region fallthrough
CT: control target
= control target key end

     0   :  { %9 = vsyncpa [#allocation3], 0  ;;  %s2314_s0 = inlined_call_operand.vmem [shape: bf16[2,128,4], index: 0, kind: input, shape index: {}]   ;;  %s2315_s1 = inlined_call_operand.vmem [shape: bf16[3,4,16], index: 1, kind: input, shape index: {}]   ;;  %s2316_s2 = inlined_call_operand.vmem [shape: bf16[2,16,16], index: 2, kind: input, shape index: {}]   ;;  %s2317_s3 = inlined_call_operand.vmem [shape: f32[1,16], index: 3, kind: input, shape index: {}]   ;;  %s2318_s4 = inlined_call_operand.hbm [shape: bf16[2,16,128], index: 4, kind: output, shape index: {}]  }
   0x1   :  { %11 = vsyncpa [#allocation3 + $0x1], 0  ;;  %s2004_s15 = smov 0   ;;  %s2006_s16 = smov 0  }
   0x2   :  { %s2008_s17 = smov 0   ;;  %s2010_s18 = smov 0  }
   0x3   :  { %s2012_s19 = smov 0   ;;  %s2014_s20 = smov 0  }
   0x4 LB: > { %s1531_s21 = sadd.s32 4294967295, %s1966_s20   ;;  %s1532_s22 = sadd.s32 4294967294, %s1966_s20   ;;  %s1966_s20 = sphi %s2014_s20, %s17_s20   ;;  %s1962_s19 = sphi %s2012_s19, %s2325_s19   ;;  %s1958_s18 = sphi %s2010_s18, %s2324_s18   ;;  %s1954_s17 = sphi %s2008_s17, %s2323_s17   ;;  %s1950_s16 = sphi %s2006_s16, %s2322_s16   ;;  %s1946_s15 = sphi %s2004_s15, %s2321_s15  }
   0x5   : > { %s29_s23 = sadd.s32 1, %s1962_s19  ;;  %s129_s24 = sadd.s32 1, %s1954_s17 }
   0x6   : > { %p31_p0 = scmp.ge.s32.totalorder %s29_s23, 2  ;;  %p139_p1 = scmp.ne.s32.totalorder %s1954_s17, %s1950_s16 }
   0x7   : > { %p140_p2 = scmp.eq.s32.totalorder %s1531_s21, 1  ;;  %p145_p3 = scmp.ne.s32.totalorder %s1950_s16, %s1946_s15 }
   0x8   : > { %s2327_s23 = smov (%p31_p0, %s29_s23), 0  ;;  %p146_p5 = scmp.eq.s32.totalorder %s1532_s22, 1 }
   0x9   : > { %p2044_p4 = por %p140_p2, %p139_p1  ;;  %s124_s26 = ssub.s32 %s1962_s19, %s2327_s23 }
   0xa   : > { %p1535_p6 = scmp.ge.s32.totalorder %s1966_s20, 1  ;;  %p127_p7 = scmp.eq.s32.totalorder %s124_s26, 0 }
   0xb   : > { %p2051_p8 = por %p146_p5, %p145_p3  ;;  %p186_p9 = scmp.lt.s32.totalorder %s1966_s20, 3 }
   0xc   : > { %s2057_s28 = scalar_select %p127_p7, %s1954_s17, %s129_s24  }
   0xd   : > { %p187_p10 = pnand %p1535_p6, %p186_p9 }
   0xe   : > { %p217_p11 = scmp.lt.s32.totalorder (!%p187_p10), %s1958_s18, 1  ;;  %s1970_s30 = smov (!%p187_p10), 16  }
   0xf   : > { %190 = sbr.rel (%p187_p10) target bundleno = 637 (0x27d), region = 36  ;;  %s1971_s5 = smov (!%p187_p10), 32  }
  0x10   : > { %s1972_s6 = smov (!%p187_p10), 48   ;;  %s1973_s7 = smov (!%p187_p10), 64  }
  0x11   : > { %s1974_s8 = smov (!%p187_p10), 80   ;;  %s213_s11 = sand.u32 (!%p187_p10), 1, %s1950_s16  }
  0x12   : > { %s1536_s12 = sshll.u32 (!%p187_p10), %s213_s11, 3  ;;  %s1602_s21 = sshll.u32 (!%p187_p10), %s1958_s18, 7 }
  0x13   : > { %s2265_s26 = scalar_lea.hbm (!%p187_p10), %s2318_s4, %s1602_s21  ;;  %s2267_s29 = scalar_lea.sflag (!%p187_p10), [#allocation3], %s213_s11 }
  0x14   : > { %v243_v0 = vld [vmem:[%s2315_s1] sm:$0x3]  ;;  %vm309_vm0 = vcmask 1041408   ;;  %v1555_v2 = vld [vmem:[%s2315_s1 + $0x2] sm:$0x3]  ;;  %s218_s9 = scalar_select %p217_p11, %s1958_s18, 1 }
  0x15   : > { %1812 = vmatprep.subr.msk.bf16.mxu0 %vm309_vm0, %v243_v0  ;;  %v311_v1 = vsel %vm309_vm0, %v243_v0, 0  ;;  %v1564_v3 = vld [vmem:[%s2315_s1 + $0x4] sm:$0x3]  ;;  %1813 = vmatprep.subr.msk.bf16.mxu1 %vm309_vm0, %v1555_v2  ;;  %v413_v4 = vsel %vm309_vm0, %v1555_v2, 0  ;;  %vm284_vm1 = vcmask 31744   ;;  %v1968_v14 = vmov 0.0  }
  0x16   : > { %1663 = vmatpush3.bf16.msra.mxu0 %v311_v1  ;;  %1681 = vmatpush3.bf16.msra.mxu1 %v413_v4  ;;  %s1601_s10 = sshll.u32 %s218_s9, 6  ;;  %v515_v8 = vsel %vm309_vm0, %v1564_v3, 0  ;;  %vm1969_vm2 = vmmov 0   ;;  %v2112_v24 = vld [vmem:[%s2316_s2] sm:$0xff]   ;;  %vm646_vm3 = vcmask 130048   ;;  %v2123_v31 = vld [vmem:[%s2316_s2 + $0x8] sm:$0xff]  }
  0x17   : > { %1814 = vmatprep.subr.msk.bf16.mxu0 %vm309_vm0, %v1564_v3  ;;  %s224_s13 = scalar_lea.vmem %s2314_s0, %s1601_s10  ;;  %1716 = vmatprep.subr.bf16.mxu1 %v1968_v14  ;;  %v2151_v49 = vld [vmem:[%s2317_s3] ss:$0 sm:$0xff]  ;;  %s1975_s9 = smov 96   ;;  %vm1411_vm4 = vcmask 261120   ;;  %vm1414_vm5 = vcmask 392192   ;;  %vm1417_vm6 = vcmask 523264  }
  0x18   : > { %v1880_v5 = vld [vmem:[%s224_s13] sm:$0xff]   ;;  %v1881_v6 = vld [vmem:[%s224_s13 + $0x8] sm:$0xff]   ;;  %v1882_v7 = vld [vmem:[%s224_s13 + $0x10] sm:$0xff]   ;;  %s1976_s10 = smov 112   ;;  %vm1420_vm7 = vcmask 654336   ;;  %vm1423_vm8 = vcmask 785408  }
  0x19   : > { %1664 = vmatprep.mubr.msk.bf16.mxu0 %vm284_vm1, %v1880_v5  ;;  %1682 = vmatprep.mubr.msk.bf16.mxu1 %vm284_vm1, %v1880_v5  ;;  %v1883_v9 = vld [vmem:[%s224_s13 + $0x18] sm:$0xff]   ;;  %v1884_v10 = vld [vmem:[%s224_s13 + $0x20] sm:$0xff]   ;;  %v1885_v11 = vld [vmem:[%s224_s13 + $0x28] sm:$0xff]   ;;  %vm1426_vm9 = vcmask 916480  }
  0x1a   : > { %1665 = vmatmul.mubr.msk.bf16.vlgmr.msra.gmra.mxu0 %vm284_vm1, %v1881_v6  ;;  %1683 = vmatmul.mubr.msk.bf16.vlgmr.msra.gmra.mxu1 %vm284_vm1, %v1881_v6  ;;  %v1886_v12 = vld [vmem:[%s224_s13 + $0x30] sm:$0xff]   ;;  %v1887_v13 = vld [vmem:[%s224_s13 + $0x38] sm:$0xff]   ;;  %s215_s13 = scalar_lea.vmem [#allocation2], %s1536_s12 }
  0x1b   : > { %1668 = vmatprep.mubr.msk.bf16.mxu0 %vm284_vm1, %v1882_v7  ;;  %1686 = vmatprep.mubr.msk.bf16.mxu1 %vm284_vm1, %v1882_v7  ;;  %s1453_s14 = sshll.u32 %s215_s13, 4  ;;  %s2260_s14 = int_to_ptr.vmem [resolvable:$true] %s1453_s14 }
  0x1c   : > { %1699 = vmatpush3.bf16.msra.mxu0 %v515_v8  ;;  %s1890_s18 = scalar_lea.vmem %s2260_s14, 128 }
  0x1d   : > { %1740 = vmatprep.subr.bf16.mxu0 %v1968_v14  ;;  %p1891_p12 = scmp.ne.s32.totalorder %s2260_s14, %s1890_s18 }
  0x1f   : > { %p1892_p13 = pnand %p1891_p12, %p2044_p4 }
  0x21   : > { %p1893_p0 = pneg %p1892_p13 }
  0x22   : > { %1669 = vmatmul.mubr.msk.bf16.gmra.mxu0 %vm284_vm1, %v1883_v9  ;;  %1687 = vmatmul.mubr.msk.bf16.gmra.mxu1 %vm284_vm1, %v1883_v9 }
  0x23   : > { %1672 = vmatprep.mubr.msk.bf16.mxu0 %vm284_vm1, %v1884_v10  ;;  %1690 = vmatprep.mubr.msk.bf16.mxu1 %vm284_vm1, %v1884_v10 }
  0x2a   : > { %1673 = vmatmul.mubr.msk.bf16.gmra.mxu0 %vm284_vm1, %v1885_v11  ;;  %1691 = vmatmul.mubr.msk.bf16.gmra.mxu1 %vm284_vm1, %v1885_v11 }
  0x2b   : > { %1676 = vmatprep.mubr.msk.bf16.mxu0 %vm284_vm1, %v1886_v12  ;;  %1694 = vmatprep.mubr.msk.bf16.mxu1 %vm284_vm1, %v1886_v12 }
  0x32   : > { %1677 = vmatmul.mubr.msk.bf16.gmra.mxu0 %vm284_vm1, %v1887_v13  ;;  %1695 = vmatmul.mubr.msk.bf16.gmra.mxu1 %vm284_vm1, %v1887_v13 }
  0x33   : > { %1700 = vmatprep.mubr.msk.bf16.mxu0 %vm284_vm1, %v1880_v5  ;;  %1718 = vmatprep.mubr.msk.bf16.mxu1 %vm1969_vm2, %v1968_v14 }
  0x3a   : > { %1701 = vmatmul.mubr.msk.bf16.vlgmr.msra.gmra.mxu0 %vm284_vm1, %v1881_v6 }
  0x3b   : > { %1704 = vmatprep.mubr.msk.bf16.mxu0 %vm284_vm1, %v1882_v7 }
  0x42   : > { %1705 = vmatmul.mubr.msk.bf16.gmra.mxu0 %vm284_vm1, %v1883_v9 }
  0x43   : > { %1708 = vmatprep.mubr.msk.bf16.mxu0 %vm284_vm1, %v1884_v10 }
  0x4a   : > { %1709 = vmatmul.mubr.msk.bf16.gmra.mxu0 %vm284_vm1, %v1885_v11 }
  0x4b   : > { %1712 = vmatprep.mubr.msk.bf16.mxu0 %vm284_vm1, %v1886_v12 }
  0x52   : > { %1713 = vmatmul.mubr.msk.bf16.gmra.mxu0 %vm284_vm1, %v1887_v13 }
  0x53   : > { %1742 = vmatprep.mubr.msk.bf16.mxu0 %vm1969_vm2, %v1968_v14 }
  0xda   : > { %v1666_v15 = vpop.f32.mrf.mxu0  ;;  %v1684_v16 = vpop.f32.mrf.mxu1 }
  0xdc   : > { %v347_v17 = vpop.f32.mrf.mxu0  ;;  %v449_v18 = vpop.f32.mrf.mxu1 }
  0xde   : > { %v1667_v19 = vpop.f32.mrf.mxu0  ;;  %v1685_v20 = vpop.f32.mrf.mxu1 }
  0xdf   : > { %v615_v36 = vpack.c.bf16 %v1667_v19, %v1666_v15  ;;  %v623_v44 = vpack.c.bf16 %v1685_v20, %v1684_v16 }
  0xe0   : > { %v350_v21 = vpop.f32.mrf.mxu0  ;;  %v452_v25 = vpop.f32.mrf.mxu1 }
  0xe1   : > { %v614_v22 = vpack.c.bf16 %v350_v21, %v347_v17  ;;  %v622_v27 = vpack.c.bf16 %v452_v25, %v449_v18 }
  0xe2   : > { %v1670_v23 = vpop.f32.mrf.mxu0  ;;  %v1688_v35 = vpop.f32.mrf.mxu1 }
  0xe3   : > { %1717 = vmatpush3.bf16.msra.mxu1 %v614_v22 }
  0xe4   : > { %v363_v26 = vpop.f32.mrf.mxu0  ;;  %1722 = vmatprep.subr.bf16.mxu1 %v1968_v14  ;;  %v465_v39 = vpop.f32.mrf.mxu1 }
  0xe6   : > { %1719 = vmatmul.mubr.msk.bf16.vlgmr.msra.gmra.mxu1 %vm646_vm3, %v2112_v24  ;;  %v1671_v28 = vpop.f32.mrf.mxu0  ;;  %v1689_v42 = vpop.f32.mrf.mxu1 }
  0xe7   : > { %1723 = vmatpush3.bf16.msra.mxu1 %v622_v27  ;;  %1724 = vmatprep.mubr.msk.bf16.mxu1 %vm1969_vm2, %v1968_v14  ;;  %v617_v33 = vpack.c.bf16 %v1671_v28, %v1670_v23  ;;  %v625_v61 = vpack.c.bf16 %v1689_v42, %v1688_v35 }
  0xe8   : > { %v366_v29 = vpop.f32.mrf.mxu0  ;;  %1728 = vmatprep.subr.bf16.mxu1 %v1968_v14  ;;  %v468_v46 = vpop.f32.mrf.mxu1 }
  0xe9   : > { %v616_v30 = vpack.c.bf16 %v366_v29, %v363_v26  ;;  %v624_v51 = vpack.c.bf16 %v468_v46, %v465_v39 }
  0xea   : > { %v1674_v32 = vpop.f32.mrf.mxu0  ;;  %v1692_v52 = vpop.f32.mrf.mxu1 }
  0xeb   : > { %1741 = vmatpush3.bf16.msra.mxu0 %v616_v30 }
  0xec   : > { %1752 = vmatprep.subr.bf16.mxu0 %v1968_v14  ;;  %v379_v34 = vpop.f32.mrf.mxu0  ;;  %v481_v56 = vpop.f32.mrf.mxu1 }
  0xee   : > { %1725 = vmatmul.mubr.msk.bf16.vlgmr.msra.gmra.mxu1 %vm646_vm3, %v2123_v31  ;;  %1743 = vmatmul.mubr.msk.bf16.vlgmr.msra.gmra.mxu0 %vm646_vm3, %v2112_v24  ;;  %v1675_v37 = vpop.f32.mrf.mxu0  ;;  %v1693_v60 = vpop.f32.mrf.mxu1 }
  0xef   : > { %1729 = vmatpush3.bf16.msra.mxu1 %v615_v36  ;;  %1753 = vmatpush3.bf16.msra.mxu0 %v617_v33  ;;  %v619_v50 = vpack.c.bf16 %v1675_v37, %v1674_v32  ;;  %v627_v4 = vpack.c.bf16 %v1693_v60, %v1692_v52 }
  0xf0   : > { %1730 = vmatprep.mubr.msk.bf16.mxu1 %vm1969_vm2, %v1968_v14  ;;  %1754 = vmatprep.mubr.msk.bf16.mxu0 %vm1969_vm2, %v1968_v14  ;;  %v382_v38 = vpop.f32.mrf.mxu0  ;;  %v484_v62 = vpop.f32.mrf.mxu1 }
  0xf1   : > { %1734 = vmatprep.subr.bf16.mxu1 %v1968_v14  ;;  %1764 = vmatprep.subr.bf16.mxu0 %v1968_v14  ;;  %v618_v41 = vpack.c.bf16 %v382_v38, %v379_v34  ;;  %v626_v0 = vpack.c.bf16 %v484_v62, %v481_v56 }
  0xf2   : > { %v1678_v40 = vpop.f32.mrf.mxu0  ;;  %v1696_v1 = vpop.f32.mrf.mxu1 }
  0xf4   : > { %v395_v43 = vpop.f32.mrf.mxu0  ;;  %v497_v2 = vpop.f32.mrf.mxu1 }
  0xf6   : > { %1731 = vmatmul.mubr.msk.bf16.vlgmr.msra.gmra.mxu1 %vm646_vm3, %v2112_v24  ;;  %1755 = vmatmul.mubr.msk.bf16.vlgmr.msra.gmra.mxu0 %vm646_vm3, %v2112_v24  ;;  %v1679_v45 = vpop.f32.mrf.mxu0  ;;  %v1697_v3 = vpop.f32.mrf.mxu1 }
  0xf7   : > { %1735 = vmatpush3.bf16.msra.mxu1 %v623_v44  ;;  %1765 = vmatpush3.bf16.msra.mxu0 %v618_v41  ;;  %v621_v63 = vpack.c.bf16 %v1679_v45, %v1678_v40  ;;  %v629_v7 = vpack.c.bf16 %v1697_v3, %v1696_v1 }
  0xf8   : > { %1736 = vmatprep.mubr.msk.bf16.mxu1 %vm1969_vm2, %v1968_v14  ;;  %1766 = vmatprep.mubr.msk.bf16.mxu0 %vm1969_vm2, %v1968_v14  ;;  %v398_v47 = vpop.f32.mrf.mxu0  ;;  %v500_v5 = vpop.f32.mrf.mxu1 }
  0xf9   : > { %1746 = vmatprep.subr.bf16.mxu1 %v1968_v14  ;;  %1776 = vmatprep.subr.bf16.mxu0 %v1968_v14  ;;  %v620_v59 = vpack.c.bf16 %v398_v47, %v395_v43  ;;  %v628_v6 = vpack.c.bf16 %v500_v5, %v497_v2 }
  0xfa   : > { %v2146_v48 = vpop.f32.mrf.mxu0 }
  0xfb   : > { %v750_v47 = vadd.f32 %v2146_v48, %v2151_v49 }
  0xfc   : > { %v551_v53 = vpop.f32.mrf.mxu0 }
  0xfd   : > { %v2154_v54 = vadd.f32 %v2151_v49, %v551_v53 }
  0xfe   : > { %1737 = vmatmul.mubr.msk.bf16.vlgmr.msra.gmra.mxu1 %vm646_vm3, %v2123_v31  ;;  %1767 = vmatmul.mubr.msk.bf16.vlgmr.msra.gmra.mxu0 %vm646_vm3, %v2112_v24  ;;  %v2160_v55 = vpop.f32.mrf.mxu0 }
  0xff   : > { %1747 = vmatpush3.bf16.msra.mxu1 %v624_v51  ;;  %1777 = vmatpush3.bf16.msra.mxu0 %v619_v50  ;;  %v751_v52 = vadd.f32 %v2160_v55, %v2151_v49 }
 0x100   : > { %1748 = vmatprep.mubr.msk.bf16.mxu1 %vm1969_vm2, %v1968_v14  ;;  %1778 = vmatprep.mubr.msk.bf16.mxu0 %vm1969_vm2, %v1968_v14  ;;  %v554_v57 = vpop.f32.mrf.mxu0 }
 0x101   : > { %1758 = vmatprep.subr.bf16.mxu1 %v1968_v14  ;;  %1788 = vmatprep.subr.bf16.mxu0 %v1968_v14  ;;  %v638_v58 = vadd.f32 %v2151_v49, %v554_v57 }
 0x102   : > { %v2206_v8 = vpop.f32.mrf.mxu0 }
 0x104   : > { %v567_v9 = vpop.f32.mrf.mxu0 }
 0x106   : > { %1749 = vmatmul.mubr.msk.bf16.vlgmr.msra.gmra.mxu1 %vm646_vm3, %v2123_v31  ;;  %1779 = vmatmul.mubr.msk.bf16.vlgmr.msra.gmra.mxu0 %vm646_vm3, %v2112_v24  ;;  %v2208_v10 = vpop.f32.mrf.mxu0 }
 0x107   : > { %1759 = vmatpush3.bf16.msra.mxu1 %v625_v61  ;;  %1789 = vmatpush3.bf16.msra.mxu0 %v620_v59  ;;  %v841_v61 = vadd.f32 %v2151_v49, %v567_v9 }
 0x108   : > { %1760 = vmatprep.mubr.msk.bf16.mxu1 %vm1969_vm2, %v1968_v14  ;;  %1790 = vmatprep.mubr.msk.bf16.mxu0 %vm1969_vm2, %v1968_v14  ;;  %v570_v11 = vpop.f32.mrf.mxu0 }
 0x109   : > { %1770 = vmatprep.subr.bf16.mxu1 %v1968_v14  ;;  %1800 = vmatprep.subr.bf16.mxu0 %v1968_v14 }
 0x10a   : > { %v2210_v12 = vpop.f32.mrf.mxu0 }
 0x10c   : > { %v2212_v13 = vpop.f32.mrf.mxu0 }
 0x10e   : > { %1761 = vmatmul.mubr.msk.bf16.vlgmr.msra.gmra.mxu1 %vm646_vm3, %v2123_v31  ;;  %1791 = vmatmul.mubr.msk.bf16.vlgmr.msra.gmra.mxu0 %vm646_vm3, %v2112_v24  ;;  %v2214_v15 = vpop.f32.mrf.mxu0 }
 0x10f   : > { %1771 = vmatpush3.bf16.msra.mxu1 %v626_v0  ;;  %1801 = vmatpush3.bf16.msra.mxu0 %v621_v63 }
 0x110   : > { %1772 = vmatprep.mubr.msk.bf16.mxu1 %vm1969_vm2, %v1968_v14  ;;  %1802 = vmatprep.mubr.msk.bf16.mxu0 %vm1969_vm2, %v1968_v14  ;;  %v2216_v16 = vpop.f32.mrf.mxu0 }
 0x111   : > { %1782 = vmatprep.subr.bf16.mxu1 %v1968_v14 }
 0x112   : > { %v2218_v17 = vpop.f32.mrf.mxu0 }
 0x116   : > { %1773 = vmatmul.mubr.msk.bf16.vlgmr.msra.gmra.mxu1 %vm646_vm3, %v2123_v31  ;;  %1803 = vmatmul.mubr.msk.bf16.vlgmr.msra.gmra.mxu0 %vm646_vm3, %v2112_v24 }
 0x117   : > { %1783 = vmatpush3.bf16.msra.mxu1 %v627_v4  ;;  %1784 = vmatprep.mubr.msk.bf16.mxu1 %vm1969_vm2, %v1968_v14  ;;  %v842_v4 = vadd.f32 %v2151_v49, %v570_v11 }
 0x118   : > { %1794 = vmatprep.subr.bf16.mxu1 %v1968_v14 }
 0x11e   : > { %1785 = vmatmul.mubr.msk.bf16.vlgmr.msra.gmra.mxu1 %vm646_vm3, %v2123_v31 }
 0x11f   : > { %1795 = vmatpush3.bf16.msra.mxu1 %v628_v6  ;;  %1796 = vmatprep.mubr.msk.bf16.mxu1 %vm1969_vm2, %v1968_v14 }
 0x120   : > { %1806 = vmatprep.subr.bf16.mxu1 %v1968_v14 }
 0x126   : > { %1797 = vmatmul.mubr.msk.bf16.vlgmr.msra.gmra.mxu1 %vm646_vm3, %v2123_v31 }
 0x127   : > { %1807 = vmatpush3.bf16.msra.mxu1 %v629_v7  ;;  %1808 = vmatprep.mubr.msk.bf16.mxu1 %vm1969_vm2, %v1968_v14  ;;  %v2220_v14 = vpop.f32.mrf.mxu0 }
 0x129   : > { %v2222_v19 = vpop.f32.mrf.mxu0 }
 0x12b   : > { %v2225_v23 = vpop.f32.mrf.mxu0 }
 0x12e   : > { %1809 = vmatmul.mubr.msk.bf16.vlgmr.msra.gmra.mxu1 %vm646_vm3, %v2123_v31 }
 0x1a6   : > { %v684_v18 = vpop.f32.mrf.mxu1 }
 0x1a7   : > { %v691_v20 = vadd.f32 %v684_v18, %v2154_v54 }
 0x1a8   : > { %v1720_v21 = vpop.f32.mrf.mxu1 }
 0x1aa   : > { %v687_v22 = vpop.f32.mrf.mxu1 }
 0x1ab   : > { %v692_v24 = vadd.f32 %v687_v22, %v638_v58 }
 0x1ac   : > { %v1721_v25 = vpop.f32.mrf.mxu1 }
 0x1ae   : > { %v738_v26 = vpop.f32.mrf.mxu1  ;;  %v877_v27 = vpop.f32.mrf.mxu0 }
 0x1af   : > { %v745_v28 = vadd.f32 %v738_v26, %v691_v20  ;;  %v884_v5 = vadd.f32 %v877_v27, %v841_v61  ;;  %v932_v26 = vadd.f32 %v2206_v8, %v2151_v49  ;;  %v933_v27 = vadd.f32 %v2208_v10, %v2151_v49 }
 0x1b0   : > { %v1726_v29 = vpop.f32.mrf.mxu1  ;;  %v1744_v30 = vpop.f32.mrf.mxu0 }
 0x1b1   : > { %v747_v36 = vmax.f32 %v745_v28, 0.0 }
 0x1b2   : > { %v741_v31 = vpop.f32.mrf.mxu1  ;;  %v880_v32 = vpop.f32.mrf.mxu0 }
 0x1b3   : > { %v746_v33 = vadd.f32 %v741_v31, %v692_v24  ;;  %v885_v18 = vadd.f32 %v880_v32, %v842_v4 }
 0x1b4   : > { %v1727_v34 = vpop.f32.mrf.mxu1  ;;  %v1745_v35 = vpop.f32.mrf.mxu0 }
 0x1b5   : > { %v748_v37 = vmax.f32 %v746_v33, 0.0 }
 0x1b6   : > { %v786_v38 = vpop.f32.mrf.mxu1  ;;  %v968_v39 = vpop.f32.mrf.mxu0 }
 0x1b7   : > { %v2227_v40 = vpack.c.bf16 %v748_v37, %v747_v36  ;;  %v793_v53 = vadd.f32 %v786_v38, %v750_v47  ;;  %v975_v31 = vadd.f32 %v968_v39, %v932_v26  ;;  %v1024_v39 = vadd.f32 %v2151_v49, %v2216_v16 }
 0x1b8   : > { %v1732_v41 = vpop.f32.mrf.mxu1  ;;  %v1756_v42 = vpop.f32.mrf.mxu0  ;;  %v1115_v16 = vadd.f32 %v2214_v15, %v2151_v49  ;;  %v1206_v15 = vadd.f32 %v2151_v49, %v2225_v23 }
 0x1ba   : > { %v789_v43 = vpop.f32.mrf.mxu1  ;;  %v971_v44 = vpop.f32.mrf.mxu0 }
 0x1bb   : > { %v794_v57 = vadd.f32 %v789_v43, %v751_v52  ;;  %v976_v35 = vadd.f32 %v971_v44, %v933_v27  ;;  %v1023_v43 = vadd.f32 %v2151_v49, %v2212_v13 }
 0x1bc   : > { %v1733_v45 = vpop.f32.mrf.mxu1  ;;  %v1757_v46 = vpop.f32.mrf.mxu0 }
 0x1be   : > { %v829_v50 = vpop.f32.mrf.mxu1  ;;  %v1059_v51 = vpop.f32.mrf.mxu0 }
 0x1bf   : > { %v836_v58 = vadd.f32 %v829_v50, %v793_v53  ;;  %v1066_v50 = vadd.f32 %v1059_v51, %v1023_v43 }
 0x1c0   : > { %v1738_v54 = vpop.f32.mrf.mxu1  ;;  %v1768_v56 = vpop.f32.mrf.mxu0 }
 0x1c1   : > { %v838_v1 = vmax.f32 %v836_v58, 0.0 }
 0x1c2   : > { %v832_v59 = vpop.f32.mrf.mxu1  ;;  %v1062_v60 = vpop.f32.mrf.mxu0 }
 0x1c3   : > { %v837_v62 = vadd.f32 %v832_v59, %v794_v57  ;;  %v1067_v54 = vadd.f32 %v1062_v60, %v1024_v39 }
 0x1c4   : > { %v1739_v63 = vpop.f32.mrf.mxu1  ;;  %v1769_v0 = vpop.f32.mrf.mxu0 }
 0x1c5   : > { %v839_v2 = vmax.f32 %v837_v62, 0.0  ;;  %v1114_v62 = vadd.f32 %v2210_v12, %v2151_v49  ;;  %v1205_v12 = vadd.f32 %v2151_v49, %v2220_v14 }
 0x1c6   : > { %v920_v48 = vpop.f32.mrf.mxu1  ;;  %v1150_v3 = vpop.f32.mrf.mxu0 }
 0x1c7   : > { %v840_v55 = vpack.c.bf16 %v839_v2, %v838_v1  ;;  %v927_v20 = vadd.f32 %v920_v48, %v884_v5  ;;  %v1157_v51 = vadd.f32 %v1150_v3, %v1114_v62 }
 0x1c8   : > { %v1750_v6 = vpop.f32.mrf.mxu1  ;;  %v1780_v7 = vpop.f32.mrf.mxu0 }
 0x1c9   : > { %1388 = vrot.lane.b32.xlu0 %v840_v55, %s1970_s30  ;;  %v929_v28 = vmax.f32 %v927_v20, 0.0  ;;  %s1977_s30 = smov [#allocation2]  }
 0x1ca   : > { %v923_v21 = vpop.f32.mrf.mxu1  ;;  %v1153_v22 = vpop.f32.mrf.mxu0 }
 0x1cb   : > { %v928_v9 = vadd.f32 %v923_v21, %v885_v18  ;;  %v1158_v48 = vadd.f32 %v1153_v22, %v1115_v16 }
 0x1cc   : > { %v1751_v24 = vpop.f32.mrf.mxu1  ;;  %v1781_v25 = vpop.f32.mrf.mxu0 }
 0x1cd   : > { %v930_v29 = vmax.f32 %v928_v9, 0.0 }
 0x1ce   : > { %v1011_v30 = vpop.f32.mrf.mxu1  ;;  %v1241_v11 = vpop.f32.mrf.mxu0 }
 0x1cf   : > { %v931_v32 = vpack.c.bf16 %v930_v29, %v929_v28  ;;  %v1018_v36 = vadd.f32 %v1011_v30, %v975_v31  ;;  %v1248_v3 = vadd.f32 %v1241_v11, %v1205_v12  ;;  %v1296_v29 = vadd.f32 %v2218_v17, %v2151_v49 }
 0x1d0   : > { %v1762_v33 = vpop.f32.mrf.mxu1  ;;  %v1792_v34 = vpop.f32.mrf.mxu0  ;;  %v1297_v31 = vadd.f32 %v2222_v19, %v2151_v49 }
 0x1d1   : > { %1391 = vrot.lane.b32.xlu0 %v931_v32, %s1971_s5  ;;  %v1020_v45 = vmax.f32 %v1018_v36, 0.0  ;;  %s1894_s5 = sshll.u32 %s1977_s30, 4  ;;  %s1895_s5 = int_to_ptr.vmem [resolvable:$false] %s1894_s5 }
 0x1d2   : > { %v1014_v37 = vpop.f32.mrf.mxu1  ;;  %v1244_v38 = vpop.f32.mrf.mxu0  ;;  %p1897_p1 = scmp.lt.s32.totalorder %s2260_s14, %s1895_s5 }
 0x1d3   : > { %v1019_v41 = vadd.f32 %v1014_v37, %v976_v35  ;;  %v1249_v22 = vadd.f32 %v1244_v38, %v1206_v15 }
 0x1d4   : > { %v1763_v42 = vpop.f32.mrf.mxu1  ;;  %v1793_v8 = vpop.f32.mrf.mxu0 }
 0x1d5   : > { %v1021_v46 = vmax.f32 %v1019_v41, 0.0 }
 0x1d6   : > { %v1102_v47 = vpop.f32.mrf.mxu1  ;;  %v1332_v10 = vpop.f32.mrf.mxu0 }
 0x1d7   : > { %v1022_v44 = vpack.c.bf16 %v1021_v46, %v1020_v45  ;;  %v1109_v56 = vadd.f32 %v1102_v47, %v1066_v50  ;;  %v1339_v23 = vadd.f32 %v1332_v10, %v1296_v29 }
 0x1d8   : > { %v1774_v52 = vpop.f32.mrf.mxu1  ;;  %v1804_v53 = vpop.f32.mrf.mxu0 }
 0x1d9   : > { %1394 = vrot.lane.b32.xlu1 %v1022_v44, %s1972_s6  ;;  %v1111_v63 = vmax.f32 %v1109_v56, 0.0  ;;  %s1896_s6 = scalar_lea.vmem %s1895_s5, 256 }
 0x1da   : > { %v1105_v57 = vpop.f32.mrf.mxu1  ;;  %v1335_v58 = vpop.f32.mrf.mxu0  ;;  %p1898_p2 = scmp.lt.s32.totalorder %s1896_s6, %s1890_s18 }
 0x1db   : > { %v1110_v59 = vadd.f32 %v1105_v57, %v1067_v54  ;;  %v1340_v33 = vadd.f32 %v1335_v58, %v1297_v31 }
 0x1dc   : > { %v1775_v61 = vpop.f32.mrf.mxu1  ;;  %v1805_v13 = vpop.f32.mrf.mxu0  ;;  %p1899_p3 = por %p1898_p2, %p1897_p1 }
 0x1dd   : > { %v1112_v0 = vmax.f32 %v1110_v59, 0.0 }
 0x1de   : > { %v1193_v1 = vpop.f32.mrf.mxu1  ;;  %p1900_p5 = pnand %p1899_p3, %p1893_p0 }
 0x1df   : > { %v1113_v2 = vpack.c.bf16 %v1112_v0, %v1111_v63  ;;  %v1200_v4 = vadd.f32 %v1193_v1, %v1157_v51 }
 0x1e0   : > { %v1786_v60 = vpop.f32.mrf.mxu1 }
 0x1e1   : > { %1397 = vrot.lane.b32.xlu1 %v1113_v2, %s1973_s7  ;;  %v1202_v7 = vmax.f32 %v1200_v4, 0.0 }
 0x1e2   : > { %v1196_v5 = vpop.f32.mrf.mxu1 }
 0x1e3   : > { %v1201_v55 = vadd.f32 %v1196_v5, %v1158_v48 }
 0x1e4   : > { %v1787_v6 = vpop.f32.mrf.mxu1 }
 0x1e5   : > { %v1203_v18 = vmax.f32 %v1201_v55, 0.0 }
 0x1e6   : > { %v1284_v20 = vpop.f32.mrf.mxu1 }
 0x1e7   : > { %v1204_v21 = vpack.c.bf16 %v1203_v18, %v1202_v7  ;;  %v1291_v24 = vadd.f32 %v1284_v20, %v1248_v3 }
 0x1e8   : > { %v1798_v9 = vpop.f32.mrf.mxu1 }
 0x1e9   : > { %1400 = vrot.lane.b32.xlu0 %v1204_v21, %s1974_s8  ;;  %v1293_v14 = vmax.f32 %v1291_v24, 0.0 }
 0x1ea   : > { %v1287_v25 = vpop.f32.mrf.mxu1 }
 0x1eb   : > { %v1292_v26 = vadd.f32 %v1287_v25, %v1249_v22 }
 0x1ec   : > { %v1799_v28 = vpop.f32.mrf.mxu1 }
 0x1ed   : > { %v1294_v30 = vmax.f32 %v1292_v26, 0.0 }
 0x1ee   : > { %v1375_v27 = vpop.f32.mrf.mxu1 }
 0x1ef   : > { %v1295_v11 = vpack.c.bf16 %v1294_v30, %v1293_v14  ;;  %v1382_v34 = vadd.f32 %v1375_v27, %v1339_v23 }
 0x1f0   : > { %v1810_v32 = vpop.f32.mrf.mxu1 }
 0x1f1   : > { %1403 = vrot.lane.b32.xlu1 %v1295_v11, %s1975_s9  ;;  %v1384_v38 = vmax.f32 %v1382_v34, 0.0 }
 0x1f2   : > { %v1378_v35 = vpop.f32.mrf.mxu1 }
 0x1f3   : > { %v1383_v36 = vadd.f32 %v1378_v35, %v1340_v33 }
 0x1f4   : > { %v1811_v37 = vpop.f32.mrf.mxu1 }
 0x1f5   : > { %v1385_v41 = vmax.f32 %v1383_v36, 0.0 }
 0x1f7   : > { %v1386_v17 = vpack.c.bf16 %v1385_v41, %v1384_v38 }
 0x1f9   : > { %1406 = vrot.lane.b32.xlu0 %v1386_v17, %s1976_s10 }
 0x23b   : > { %v1389_v42 = vpop.permute.xlu0 %1388 }
 0x23c   : > { %v1410_v43 = vsel %vm646_vm3, %v2227_v40, %v1389_v42 }
 0x243   : > { %v1392_v49 = vpop.permute.xlu0 %1391 }
 0x244   : > { %v1413_v45 = vsel %vm1411_vm4, %v1410_v43, %v1392_v49 }
 0x24b   : > { %v1395_v8 = vpop.permute.xlu1 %1394 }
 0x24c   : > { %v1416_v47 = vsel %vm1414_vm5, %v1413_v45, %v1395_v8 }
 0x253   : > { %v1398_v19 = vpop.permute.xlu1 %1397 }
 0x254   : > { %v1419_v39 = vsel %vm1417_vm6, %v1416_v47, %v1398_v19 }
 0x25b   : > { %v1401_v46 = vpop.permute.xlu0 %1400 }
 0x25c   : > { %v1422_v50 = vsel %vm1420_vm7, %v1419_v39, %v1401_v46 }
 0x263   : > { %v1404_v10 = vpop.permute.xlu1 %1403 }
 0x264   : > { %v1425_v44 = vsel %vm1423_vm8, %v1422_v50, %v1404_v10 }
 0x26b   : > { %v1407_v52 = vpop.permute.xlu0 %1406 }
 0x26c   : > { %v1428_v53 = vsel %vm1426_vm9, %v1425_v44, %v1407_v52 }
 0x26d   : > { %v1594_v40 = vcombine.low %v1428_v53, %v1428_v53  ;;  %v1595_v54 = vcombine.high %v1428_v53, %v1428_v53 }
 0x26f   : > { %1436 = vst [vmem:[%s215_s13] sm:$0xf] %v1594_v40  ;;  %1437 = vst [vmem:[%s215_s13 + $0x4] sm:$0xf] %v1595_v54 }
 0x270   : > { %1903 = shalt.err (!%p1900_p5)
}
 0x271   : > { %s1904_s8 = scalar_lea.hbm %s2265_s26, 128  ;;  %s1908_s11 = scalar_lea.hbm %s2318_s4, 256 }
 0x272   : > { %p1905_p6 = scmp.ne.s32.totalorder %s2265_s26, %s1904_s8  ;;  %p1909_p10 = scmp.lt.s32.totalorder %s2265_s26, %s2318_s4 }
 0x273   : > { %p1910_p11 = scmp.lt.s32.totalorder %s1908_s11, %s1904_s8 }
 0x274   : > { %p1906_p7 = pnand %p1905_p6, %p2044_p4 }
 0x275   : > { %p1911_p12 = por %p1910_p11, %p1909_p10 }
 0x276   : > { %p1907_p9 = pneg %p1906_p7 }
 0x278   : > { %p1912_p13 = pnand %p1911_p12, %p1907_p9 }
 0x27a   : > { %1915 = shalt.err (!%p1912_p13)
}
 0x27b   : > { %s1978_s21 = smov 4  }
 0x27c   : > { %1815 = dma.vmem_to_hbm [thread:$0]  (%p2044_p4), %s2260_s14, 128, %s2265_s26, %s2267_s29, %s1973_s7, %s1973_s7, %s1978_s21  }
 0x27d PF: > { %p1821_p0 = scmp.ge.s32.totalorder %s1966_s20, 2  ;;  %s1468_s22 = sand.u32 1, %s1946_s15  }
 0x27e   : > { %s1469_s24 = scalar_lea.sflag [#allocation3], %s1468_s22 }
 0x27f   : > { %p1818_p1 = pnand %p1821_p0, %p2051_p8 }
 0x281   : > { %p1819_p2 = pneg %p1818_p1 }
 0x283   : > { %1941 = dma.done.wait (%p1819_p2), %s1469_s24, 128  }
 0x284   : > { %1943 = vsyncadd (%p1819_p2), %s1469_s24, 4294967168  ;;  %s17_s20 = sadd.s32 1, %s1966_s20   ;;  %s2321_s15 = smov %s1950_s16 }
 0x285   : > { %p14_p3 = scmp.ge.s32.totalorder %s17_s20, 4   ;;  %s2322_s16 = smov %s1954_s17 }
 0x286   : > { %s2323_s17 = smov %s2057_s28  ;;  %s2324_s18 = smov %s1962_s19 }
 0x287   : > { %s2325_s19 = smov %s2327_s23  ;;  %16 = sbr.rel (!%p14_p3) target bundleno = 4 (0x4), region = 74 }
 0x28c   :  { %1474 = vsyncpa [#allocation3], 1 }
 0x28d   :  { %1476 = vsyncpa [#allocation3 + $0x1], 1 }

</bundles_post_ra>
